<compile_context>
chip_gen: v7x
topology: tpu7x:2x2x1
jax: 0.10.0
libtpu: 0.0.40
codegen_flags: <defaults>
</compile_context>

<pallas_src>
import jax
import jax.numpy as jnp
from jax.experimental import pallas as pl
from jax.experimental.pallas import tpu as pltpu

INPUT_DIM = 2
HIDDEN_DIM = 64
OUTPUT_DIM = 64
FC_OUT = 3
THRESHOLD = 0.5
LANE = 128  # lane-dense fused fc output width (zero-padded in the wrapper)


def gcn_kernel(pts_ref, pts_t_ref, w1_ref, b1_ref, w23_ref, b23_ref, out_ref):
    pts = pts_ref[...]            # (BG, N, 2) f32
    pts_t = pts_t_ref[...]        # (BG, 2, N) f32 (pre-transposed in the wrapper)
    BG, N, _ = pts.shape

    # ---- pairwise squared distances (pure VPU; no sqrt, no MXU, no transpose) ----
    dx = pts[:, :, 0:1] - pts_t[:, 0:1, :]                   # (BG, N, N)
    dy = pts[:, :, 1:2] - pts_t[:, 1:2, :]
    d2 = dx * dx + dy * dy

    # ---- adjacency + folded symmetric normalization ------------------------------
    adj = (d2 < THRESHOLD * THRESHOLD).astype(jnp.float32)   # (BG, N, N), symmetric
    rowsum = jnp.sum(adj, axis=2, keepdims=True)             # (BG, N, 1), >= 1
    d_inv = jax.lax.rsqrt(rowsum)                            # (BG, N, 1)

    # ---- propagate #1: D^-1/2 A D^-1/2 @ X, unrolled over the N=8 node axis ------
    # (VPU broadcast-FMAs instead of per-graph 8x8x2 MXU pushes.)
    y0 = d_inv * pts                                         # (BG, N, 2)
    acc0 = adj[:, :, 0:1] * y0[:, 0:1, :]                    # (BG, N, 2)
    for j in range(1, N):
        acc0 = acc0 + adj[:, :, j:j + 1] * y0[:, j:j + 1, :]
    h0 = d_inv * acc0                                        # (BG, N, 2)

    # ---- conv1 (K=2 Linear) as two VPU rank-1 updates, then ReLU -----------------
    x1 = (h0[:, :, 0:1] * w1_ref[0:1, :]
          + h0[:, :, 1:2] * w1_ref[1:2, :]
          + b1_ref[...])                                     # (BG, N, H)
    x1 = jnp.maximum(x1, 0.0)

    # ---- node-mean of propagate #2, without materializing it ---------------------
    #   mean_i (D A D x1)[i,:] = (1/N) * sum_j c_j * x1[j,:]
    # with c = d_inv * (A @ d_inv) (A symmetric). conv2/fc are fused into w23/b23.
    s = adj[:, :, 0:1] * d_inv[:, 0:1, :]                    # (BG, N, 1)
    for j in range(1, N):
        s = s + adj[:, :, j:j + 1] * d_inv[:, j:j + 1, :]
    c = d_inv * s                                            # (BG, N, 1)
    mean_h1 = jnp.sum(c * x1, axis=1) * (1.0 / N)            # (BG, H)

    # ---- single lane-dense MXU matmul: fused conv2+fc, full-vreg store -----------
    out_ref[...] = (jnp.dot(mean_h1, w23_ref[...], preferred_element_type=jnp.float32)
                    + b23_ref[...])                          # (BG, 128)


def _tpu_generation():
    try:
        kind = jax.devices()[0].device_kind.lower()
    except Exception:
        return 6
    for g in (7, 6, 5):
        if f"v{g}" in kind:
            return g
    return 6


def _default_block_b(B, gen):
    if B <= 8:
        return B  # whole (tiny) batch in a single grid step
    if gen >= 7:
        # 2 TensorCores, 64 MiB VMEM: moderate blocks so >=2 grid steps exist.
        target = min(256, pl.cdiv(B, 2))
    else:
        # 1 TensorCore, 128 MiB VMEM: biggest block that fits, fewer grid steps.
        target = min(1024, B)
    return max(8, ((target + 7) // 8) * 8)


def gcn_forward(points, params, *, block_b=None, interpret=False):
    """points: (B, N, 2) f32; returns (B, 3) f32."""
    B, N, _ = points.shape
    w1, b1, w2, b2, w3, b3 = params

    # conv2 -> mean -> fc is entirely linear (ReLU is only after conv1), so fuse the
    # two Linear layers once in the wrapper and zero-pad to 128 output lanes:
    #   fc(conv2(z)) = z @ (w2 @ w3) + (b2 @ w3 + b3)
    pad = LANE - FC_OUT
    w3p = jnp.pad(w3, ((0, 0), (0, pad)))
    b3p = jnp.pad(b3, ((0, 0), (0, pad)))
    w23 = w2 @ w3p                       # (H, 128)
    b23 = b2 @ w3p + b3p                 # (1, 128)

    gen = _tpu_generation()
    if block_b is None:
        block_b = _default_block_b(B, gen)
    n_blocks = pl.cdiv(B, block_b)
    Bp = n_blocks * block_b
    if Bp != B:
        # Dummy graphs are all-zero points -> adj all ones -> finite math; sliced off.
        points = jnp.concatenate(
            [points, jnp.zeros((Bp - B, N, INPUT_DIM), points.dtype)], axis=0)
    points_t = jnp.swapaxes(points, 1, 2)   # one-time cheap XLA transpose in HBM

    # VMEM budget: every (N,N)/(N,H)/(N,1) intermediate is a lane-padded (8,128) f32
    # tile (~4 KiB); budget ~96 KiB/graph (live temporaries + double-buffered IO).
    vmem_cap = (48 << 20) if gen >= 7 else (100 << 20)
    vmem_bytes = int(min(vmem_cap, max(16 << 20, (4 << 20) + block_b * (96 << 10))))

    out = pl.pallas_call(
        gcn_kernel,
        out_shape=jax.ShapeDtypeStruct((Bp, LANE), jnp.float32),
        grid=(n_blocks,),
        in_specs=[
            pl.BlockSpec((block_b, N, INPUT_DIM), lambda b: (b, 0, 0)),   # points
            pl.BlockSpec((block_b, INPUT_DIM, N), lambda b: (b, 0, 0)),   # points^T
            pl.BlockSpec((INPUT_DIM, HIDDEN_DIM), lambda b: (0, 0)),      # w1
            pl.BlockSpec((1, HIDDEN_DIM), lambda b: (0, 0)),              # b1
            pl.BlockSpec((HIDDEN_DIM, LANE), lambda b: (0, 0)),           # fused w2@w3
            pl.BlockSpec((1, LANE), lambda b: (0, 0)),                    # fused bias
        ],
        out_specs=pl.BlockSpec((block_b, LANE), lambda b: (b, 0)),
        compiler_params=pltpu.CompilerParams(
            dimension_semantics=("parallel",),
            vmem_limit_bytes=vmem_bytes),
        interpret=interpret,
    )(points, points_t, w1, b1, w23, b23)
    return out[:B, :FC_OUT]


def gcn_reference(points, params):
    """Pure-JAX reference replicating the PyTorch forward semantics."""
    w1, b1, w2, b2, w3, b3 = params

    def single(pts):
        dist = jnp.linalg.norm(pts[:, None, :] - pts[None, :, :], axis=2)
        adj = (dist < THRESHOLD).astype(jnp.float32)
        rowsum = jnp.sum(adj, axis=1)
        d = jnp.diag(1.0 / jnp.sqrt(rowsum))
        a_norm = d @ adj @ d
        x = a_norm @ pts
        x = jnp.maximum(x @ w1 + b1[0], 0.0)
        x = (a_norm @ x) @ w2 + b2[0]
        x = jnp.mean(x, axis=0, keepdims=True) @ w3 + b3[0]
        return x[0]

    return jax.vmap(single)(points)


def init_params(key):
    """Deterministic nn.Linear-style init (uniform +/- 1/sqrt(fan_in))."""
    ks = jax.random.split(key, 6)

    def lin(kw, kb, fan_in, fan_out):
        bound = 1.0 / jnp.sqrt(jnp.float32(fan_in))
        w = jax.random.uniform(kw, (fan_in, fan_out), jnp.float32, -bound, bound)
        b = jax.random.uniform(kb, (1, fan_out), jnp.float32, -bound, bound)
        return w, b

    w1, b1 = lin(ks[0], ks[1], INPUT_DIM, HIDDEN_DIM)
    w2, b2 = lin(ks[2], ks[3], HIDDEN_DIM, OUTPUT_DIM)
    w3, b3 = lin(ks[4], ks[5], OUTPUT_DIM, FC_OUT)
    return (w1, b1, w2, b2, w3, b3)


if __name__ == "__main__":
    key = jax.random.PRNGKey(0)
    k_pts, k_params = jax.random.split(key)

    B, N = 2, 8
    # Points in [0, 1)^2 so a reasonable fraction of pairs fall under the 0.5 threshold.
    points = jax.random.uniform(k_pts, (B, N, INPUT_DIM), jnp.float32)
    params = init_params(k_params)

    out = gcn_forward(points, params)
    out = jax.block_until_ready(out)

    ref = gcn_reference(points, params)
    assert out.shape == (B, FC_OUT)
    assert jnp.allclose(out, ref, atol=1e-4, rtol=1e-4), (out, ref)

    print("KERNEL_OK")
</pallas_src>

<mosaic_0001>
module attributes {stable_mosaic.version = 11 : i64} {
  func.func @gcn_kernel(%arg0: i32, %arg1: memref<2x8x2xf32, #tpu.memory_space<vmem>>, %arg2: memref<2x2x8xf32, #tpu.memory_space<vmem>>, %arg3: memref<2x64xf32, #tpu.memory_space<vmem>>, %arg4: memref<1x64xf32, #tpu.memory_space<vmem>>, %arg5: memref<64x128xf32, #tpu.memory_space<vmem>>, %arg6: memref<1x128xf32, #tpu.memory_space<vmem>>, %arg7: memref<2x128xf32, #tpu.memory_space<vmem>>) attributes {dimension_semantics = [#tpu.dimension_semantics<parallel>], iteration_bounds = array<i64: 1>, scalar_prefetch = 0 : i64, scratch_operands = 0 : i64, tpu.core_type = #tpu.core_type<tc>, window_params = [{transform_indices = @transform_0, window_bounds = array<i64: 2, 8, 2>}, {transform_indices = @transform_1, window_bounds = array<i64: 2, 2, 8>}, {pipeline_mode = #tpu.pipeline_mode<synchronous>, transform_indices = @transform_2, window_bounds = array<i64: 2, 64>}, {pipeline_mode = #tpu.pipeline_mode<synchronous>, transform_indices = @transform_3, window_bounds = array<i64: 1, 64>}, {pipeline_mode = #tpu.pipeline_mode<synchronous>, transform_indices = @transform_4, window_bounds = array<i64: 64, 128>}, {pipeline_mode = #tpu.pipeline_mode<synchronous>, transform_indices = @transform_5, window_bounds = array<i64: 1, 128>}, {transform_indices = @transform_6, window_bounds = array<i64: 2, 128>}]} {
    %c0 = arith.constant 0 : index
    %c0_0 = arith.constant 0 : index
    %c0_1 = arith.constant 0 : index
    %0 = vector.load %arg1[%c0, %c0_0, %c0_1] : memref<2x8x2xf32, #tpu.memory_space<vmem>>, vector<2x8x2xf32>
    %c0_2 = arith.constant 0 : index
    %c0_3 = arith.constant 0 : index
    %c0_4 = arith.constant 0 : index
    %1 = vector.load %arg2[%c0_2, %c0_3, %c0_4] : memref<2x2x8xf32, #tpu.memory_space<vmem>>, vector<2x2x8xf32>
    %2 = vector.extract_strided_slice %0 {offsets = [0, 0, 0], sizes = [2, 8, 1], strides = [1, 1, 1]} : vector<2x8x2xf32> to vector<2x8x1xf32>
    %3 = vector.extract_strided_slice %1 {offsets = [0, 0, 0], sizes = [2, 1, 8], strides = [1, 1, 1]} : vector<2x2x8xf32> to vector<2x1x8xf32>
    %4 = vector.broadcast %2 : vector<2x8x1xf32> to vector<2x8x8xf32>
    %5 = vector.broadcast %3 : vector<2x1x8xf32> to vector<2x8x8xf32>
    %6 = arith.subf %4, %5 : vector<2x8x8xf32>
    %7 = vector.extract_strided_slice %0 {offsets = [0, 0, 1], sizes = [2, 8, 1], strides = [1, 1, 1]} : vector<2x8x2xf32> to vector<2x8x1xf32>
    %8 = vector.extract_strided_slice %1 {offsets = [0, 1, 0], sizes = [2, 1, 8], strides = [1, 1, 1]} : vector<2x2x8xf32> to vector<2x1x8xf32>
    %9 = vector.broadcast %7 : vector<2x8x1xf32> to vector<2x8x8xf32>
    %10 = vector.broadcast %8 : vector<2x1x8xf32> to vector<2x8x8xf32>
    %11 = arith.subf %9, %10 : vector<2x8x8xf32>
    %12 = arith.mulf %6, %6 : vector<2x8x8xf32>
    %13 = arith.mulf %11, %11 : vector<2x8x8xf32>
    %14 = arith.addf %12, %13 : vector<2x8x8xf32>
    %cst = arith.constant 2.500000e-01 : f32
    %15 = vector.broadcast %cst : f32 to vector<2x8x8xf32>
    %16 = arith.cmpf olt, %14, %15 : vector<2x8x8xf32>
    %17 = arith.extui %16 : vector<2x8x8xi1> to vector<2x8x8xi32>
    %18 = arith.sitofp %17 : vector<2x8x8xi32> to vector<2x8x8xf32>
    %cst_5 = arith.constant dense<0.000000e+00> : vector<2x8xf32>
    %19 = vector.multi_reduction <add>, %18, %cst_5 [2] : vector<2x8x8xf32> to vector<2x8xf32>
    %20 = vector.shape_cast %19 : vector<2x8xf32> to vector<2x8x1xf32>
    %21 = math.rsqrt %20 : vector<2x8x1xf32>
    %22 = vector.broadcast %21 : vector<2x8x1xf32> to vector<2x8x2xf32>
    %23 = arith.mulf %22, %0 : vector<2x8x2xf32>
    %24 = vector.extract_strided_slice %18 {offsets = [0, 0, 0], sizes = [2, 8, 1], strides = [1, 1, 1]} : vector<2x8x8xf32> to vector<2x8x1xf32>
    %25 = vector.extract_strided_slice %23 {offsets = [0, 0, 0], sizes = [2, 1, 2], strides = [1, 1, 1]} : vector<2x8x2xf32> to vector<2x1x2xf32>
    %26 = vector.broadcast %24 : vector<2x8x1xf32> to vector<2x8x2xf32>
    %27 = vector.broadcast %25 : vector<2x1x2xf32> to vector<2x8x2xf32>
    %28 = arith.mulf %26, %27 : vector<2x8x2xf32>
    %29 = vector.extract_strided_slice %18 {offsets = [0, 0, 1], sizes = [2, 8, 1], strides = [1, 1, 1]} : vector<2x8x8xf32> to vector<2x8x1xf32>
    %30 = vector.extract_strided_slice %23 {offsets = [0, 1, 0], sizes = [2, 1, 2], strides = [1, 1, 1]} : vector<2x8x2xf32> to vector<2x1x2xf32>
    %31 = vector.broadcast %29 : vector<2x8x1xf32> to vector<2x8x2xf32>
    %32 = vector.broadcast %30 : vector<2x1x2xf32> to vector<2x8x2xf32>
    %33 = arith.mulf %31, %32 : vector<2x8x2xf32>
    %34 = arith.addf %28, %33 : vector<2x8x2xf32>
    %35 = vector.extract_strided_slice %18 {offsets = [0, 0, 2], sizes = [2, 8, 1], strides = [1, 1, 1]} : vector<2x8x8xf32> to vector<2x8x1xf32>
    %36 = vector.extract_strided_slice %23 {offsets = [0, 2, 0], sizes = [2, 1, 2], strides = [1, 1, 1]} : vector<2x8x2xf32> to vector<2x1x2xf32>
    %37 = vector.broadcast %35 : vector<2x8x1xf32> to vector<2x8x2xf32>
    %38 = vector.broadcast %36 : vector<2x1x2xf32> to vector<2x8x2xf32>
    %39 = arith.mulf %37, %38 : vector<2x8x2xf32>
    %40 = arith.addf %34, %39 : vector<2x8x2xf32>
    %41 = vector.extract_strided_slice %18 {offsets = [0, 0, 3], sizes = [2, 8, 1], strides = [1, 1, 1]} : vector<2x8x8xf32> to vector<2x8x1xf32>
    %42 = vector.extract_strided_slice %23 {offsets = [0, 3, 0], sizes = [2, 1, 2], strides = [1, 1, 1]} : vector<2x8x2xf32> to vector<2x1x2xf32>
    %43 = vector.broadcast %41 : vector<2x8x1xf32> to vector<2x8x2xf32>
    %44 = vector.broadcast %42 : vector<2x1x2xf32> to vector<2x8x2xf32>
    %45 = arith.mulf %43, %44 : vector<2x8x2xf32>
    %46 = arith.addf %40, %45 : vector<2x8x2xf32>
    %47 = vector.extract_strided_slice %18 {offsets = [0, 0, 4], sizes = [2, 8, 1], strides = [1, 1, 1]} : vector<2x8x8xf32> to vector<2x8x1xf32>
    %48 = vector.extract_strided_slice %23 {offsets = [0, 4, 0], sizes = [2, 1, 2], strides = [1, 1, 1]} : vector<2x8x2xf32> to vector<2x1x2xf32>
    %49 = vector.broadcast %47 : vector<2x8x1xf32> to vector<2x8x2xf32>
    %50 = vector.broadcast %48 : vector<2x1x2xf32> to vector<2x8x2xf32>
    %51 = arith.mulf %49, %50 : vector<2x8x2xf32>
    %52 = arith.addf %46, %51 : vector<2x8x2xf32>
    %53 = vector.extract_strided_slice %18 {offsets = [0, 0, 5], sizes = [2, 8, 1], strides = [1, 1, 1]} : vector<2x8x8xf32> to vector<2x8x1xf32>
    %54 = vector.extract_strided_slice %23 {offsets = [0, 5, 0], sizes = [2, 1, 2], strides = [1, 1, 1]} : vector<2x8x2xf32> to vector<2x1x2xf32>
    %55 = vector.broadcast %53 : vector<2x8x1xf32> to vector<2x8x2xf32>
    %56 = vector.broadcast %54 : vector<2x1x2xf32> to vector<2x8x2xf32>
    %57 = arith.mulf %55, %56 : vector<2x8x2xf32>
    %58 = arith.addf %52, %57 : vector<2x8x2xf32>
    %59 = vector.extract_strided_slice %18 {offsets = [0, 0, 6], sizes = [2, 8, 1], strides = [1, 1, 1]} : vector<2x8x8xf32> to vector<2x8x1xf32>
    %60 = vector.extract_strided_slice %23 {offsets = [0, 6, 0], sizes = [2, 1, 2], strides = [1, 1, 1]} : vector<2x8x2xf32> to vector<2x1x2xf32>
    %61 = vector.broadcast %59 : vector<2x8x1xf32> to vector<2x8x2xf32>
    %62 = vector.broadcast %60 : vector<2x1x2xf32> to vector<2x8x2xf32>
    %63 = arith.mulf %61, %62 : vector<2x8x2xf32>
    %64 = arith.addf %58, %63 : vector<2x8x2xf32>
    %65 = vector.extract_strided_slice %18 {offsets = [0, 0, 7], sizes = [2, 8, 1], strides = [1, 1, 1]} : vector<2x8x8xf32> to vector<2x8x1xf32>
    %66 = vector.extract_strided_slice %23 {offsets = [0, 7, 0], sizes = [2, 1, 2], strides = [1, 1, 1]} : vector<2x8x2xf32> to vector<2x1x2xf32>
    %67 = vector.broadcast %65 : vector<2x8x1xf32> to vector<2x8x2xf32>
    %68 = vector.broadcast %66 : vector<2x1x2xf32> to vector<2x8x2xf32>
    %69 = arith.mulf %67, %68 : vector<2x8x2xf32>
    %70 = arith.addf %64, %69 : vector<2x8x2xf32>
    %71 = vector.broadcast %21 : vector<2x8x1xf32> to vector<2x8x2xf32>
    %72 = arith.mulf %71, %70 : vector<2x8x2xf32>
    %73 = vector.extract_strided_slice %72 {offsets = [0, 0, 0], sizes = [2, 8, 1], strides = [1, 1, 1]} : vector<2x8x2xf32> to vector<2x8x1xf32>
    %c0_6 = arith.constant 0 : index
    %c0_7 = arith.constant 0 : index
    %74 = vector.load %arg3[%c0_6, %c0_7] : memref<2x64xf32, #tpu.memory_space<vmem>>, vector<1x64xf32>
    %75 = vector.shape_cast %74 : vector<1x64xf32> to vector<1x1x64xf32>
    %76 = vector.broadcast %73 : vector<2x8x1xf32> to vector<2x8x64xf32>
    %77 = vector.broadcast %75 : vector<1x1x64xf32> to vector<2x8x64xf32>
    %78 = arith.mulf %76, %77 : vector<2x8x64xf32>
    %79 = vector.extract_strided_slice %72 {offsets = [0, 0, 1], sizes = [2, 8, 1], strides = [1, 1, 1]} : vector<2x8x2xf32> to vector<2x8x1xf32>
    %c1 = arith.constant 1 : index
    %c0_8 = arith.constant 0 : index
    %80 = vector.load %arg3[%c1, %c0_8] : memref<2x64xf32, #tpu.memory_space<vmem>>, vector<1x64xf32>
    %81 = vector.shape_cast %80 : vector<1x64xf32> to vector<1x1x64xf32>
    %82 = vector.broadcast %79 : vector<2x8x1xf32> to vector<2x8x64xf32>
    %83 = vector.broadcast %81 : vector<1x1x64xf32> to vector<2x8x64xf32>
    %84 = arith.mulf %82, %83 : vector<2x8x64xf32>
    %85 = arith.addf %78, %84 : vector<2x8x64xf32>
    %c0_9 = arith.constant 0 : index
    %c0_10 = arith.constant 0 : index
    %86 = vector.load %arg4[%c0_9, %c0_10] : memref<1x64xf32, #tpu.memory_space<vmem>>, vector<1x64xf32>
    %87 = vector.shape_cast %86 : vector<1x64xf32> to vector<1x1x64xf32>
    %88 = vector.broadcast %87 : vector<1x1x64xf32> to vector<2x8x64xf32>
    %89 = arith.addf %85, %88 : vector<2x8x64xf32>
    %cst_11 = arith.constant 0.000000e+00 : f32
    %90 = vector.broadcast %cst_11 : f32 to vector<2x8x64xf32>
    %91 = arith.maximumf %89, %90 : vector<2x8x64xf32>
    %92 = vector.extract_strided_slice %18 {offsets = [0, 0, 0], sizes = [2, 8, 1], strides = [1, 1, 1]} : vector<2x8x8xf32> to vector<2x8x1xf32>
    %93 = vector.extract_strided_slice %21 {offsets = [0, 0, 0], sizes = [2, 1, 1], strides = [1, 1, 1]} : vector<2x8x1xf32> to vector<2x1x1xf32>
    %94 = vector.broadcast %93 : vector<2x1x1xf32> to vector<2x8x1xf32>
    %95 = arith.mulf %92, %94 : vector<2x8x1xf32>
    %96 = vector.extract_strided_slice %18 {offsets = [0, 0, 1], sizes = [2, 8, 1], strides = [1, 1, 1]} : vector<2x8x8xf32> to vector<2x8x1xf32>
    %97 = vector.extract_strided_slice %21 {offsets = [0, 1, 0], sizes = [2, 1, 1], strides = [1, 1, 1]} : vector<2x8x1xf32> to vector<2x1x1xf32>
    %98 = vector.broadcast %97 : vector<2x1x1xf32> to vector<2x8x1xf32>
    %99 = arith.mulf %96, %98 : vector<2x8x1xf32>
    %100 = arith.addf %95, %99 : vector<2x8x1xf32>
    %101 = vector.extract_strided_slice %18 {offsets = [0, 0, 2], sizes = [2, 8, 1], strides = [1, 1, 1]} : vector<2x8x8xf32> to vector<2x8x1xf32>
    %102 = vector.extract_strided_slice %21 {offsets = [0, 2, 0], sizes = [2, 1, 1], strides = [1, 1, 1]} : vector<2x8x1xf32> to vector<2x1x1xf32>
    %103 = vector.broadcast %102 : vector<2x1x1xf32> to vector<2x8x1xf32>
    %104 = arith.mulf %101, %103 : vector<2x8x1xf32>
    %105 = arith.addf %100, %104 : vector<2x8x1xf32>
    %106 = vector.extract_strided_slice %18 {offsets = [0, 0, 3], sizes = [2, 8, 1], strides = [1, 1, 1]} : vector<2x8x8xf32> to vector<2x8x1xf32>
    %107 = vector.extract_strided_slice %21 {offsets = [0, 3, 0], sizes = [2, 1, 1], strides = [1, 1, 1]} : vector<2x8x1xf32> to vector<2x1x1xf32>
    %108 = vector.broadcast %107 : vector<2x1x1xf32> to vector<2x8x1xf32>
    %109 = arith.mulf %106, %108 : vector<2x8x1xf32>
    %110 = arith.addf %105, %109 : vector<2x8x1xf32>
    %111 = vector.extract_strided_slice %18 {offsets = [0, 0, 4], sizes = [2, 8, 1], strides = [1, 1, 1]} : vector<2x8x8xf32> to vector<2x8x1xf32>
    %112 = vector.extract_strided_slice %21 {offsets = [0, 4, 0], sizes = [2, 1, 1], strides = [1, 1, 1]} : vector<2x8x1xf32> to vector<2x1x1xf32>
    %113 = vector.broadcast %112 : vector<2x1x1xf32> to vector<2x8x1xf32>
    %114 = arith.mulf %111, %113 : vector<2x8x1xf32>
    %115 = arith.addf %110, %114 : vector<2x8x1xf32>
    %116 = vector.extract_strided_slice %18 {offsets = [0, 0, 5], sizes = [2, 8, 1], strides = [1, 1, 1]} : vector<2x8x8xf32> to vector<2x8x1xf32>
    %117 = vector.extract_strided_slice %21 {offsets = [0, 5, 0], sizes = [2, 1, 1], strides = [1, 1, 1]} : vector<2x8x1xf32> to vector<2x1x1xf32>
    %118 = vector.broadcast %117 : vector<2x1x1xf32> to vector<2x8x1xf32>
    %119 = arith.mulf %116, %118 : vector<2x8x1xf32>
    %120 = arith.addf %115, %119 : vector<2x8x1xf32>
    %121 = vector.extract_strided_slice %18 {offsets = [0, 0, 6], sizes = [2, 8, 1], strides = [1, 1, 1]} : vector<2x8x8xf32> to vector<2x8x1xf32>
    %122 = vector.extract_strided_slice %21 {offsets = [0, 6, 0], sizes = [2, 1, 1], strides = [1, 1, 1]} : vector<2x8x1xf32> to vector<2x1x1xf32>
    %123 = vector.broadcast %122 : vector<2x1x1xf32> to vector<2x8x1xf32>
    %124 = arith.mulf %121, %123 : vector<2x8x1xf32>
    %125 = arith.addf %120, %124 : vector<2x8x1xf32>
    %126 = vector.extract_strided_slice %18 {offsets = [0, 0, 7], sizes = [2, 8, 1], strides = [1, 1, 1]} : vector<2x8x8xf32> to vector<2x8x1xf32>
    %127 = vector.extract_strided_slice %21 {offsets = [0, 7, 0], sizes = [2, 1, 1], strides = [1, 1, 1]} : vector<2x8x1xf32> to vector<2x1x1xf32>
    %128 = vector.broadcast %127 : vector<2x1x1xf32> to vector<2x8x1xf32>
    %129 = arith.mulf %126, %128 : vector<2x8x1xf32>
    %130 = arith.addf %125, %129 : vector<2x8x1xf32>
    %131 = arith.mulf %21, %130 : vector<2x8x1xf32>
    %132 = vector.broadcast %131 : vector<2x8x1xf32> to vector<2x8x64xf32>
    %133 = arith.mulf %132, %91 : vector<2x8x64xf32>
    %cst_12 = arith.constant dense<0.000000e+00> : vector<2x64xf32>
    %134 = vector.multi_reduction <add>, %133, %cst_12 [1] : vector<2x8x64xf32> to vector<2x64xf32>
    %cst_13 = arith.constant 1.250000e-01 : f32
    %135 = vector.broadcast %cst_13 : f32 to vector<2x64xf32>
    %136 = arith.mulf %134, %135 : vector<2x64xf32>
    %c0_14 = arith.constant 0 : index
    %c0_15 = arith.constant 0 : index
    %137 = vector.load %arg5[%c0_14, %c0_15] : memref<64x128xf32, #tpu.memory_space<vmem>>, vector<64x128xf32>
    %cst_16 = arith.constant dense<0.000000e+00> : vector<2x128xf32>
    %138 = tpu.matmul %136, %137, %cst_16 {dimension_numbers = #tpu.dot_dimension_numbers<[1], [0], [0], [1], [0, 0, 1, 1], [], []>} : vector<2x64xf32>, vector<64x128xf32>, vector<2x128xf32> -> vector<2x128xf32>
    %c0_17 = arith.constant 0 : index
    %c0_18 = arith.constant 0 : index
    %139 = vector.load %arg6[%c0_17, %c0_18] : memref<1x128xf32, #tpu.memory_space<vmem>>, vector<1x128xf32>
    %140 = vector.broadcast %139 : vector<1x128xf32> to vector<2x128xf32>
    %141 = arith.addf %138, %140 : vector<2x128xf32>
    %c0_19 = arith.constant 0 : index
    %c0_20 = arith.constant 0 : index
    %142 = vector.load %arg7[%c0_19, %c0_20] : memref<2x128xf32, #tpu.memory_space<vmem>>, vector<2x128xf32>
    tpu.vector_store %arg7[%c0_19, %c0_20], %141 {strides = array<i32>} : memref<2x128xf32, #tpu.memory_space<vmem>>, vector<2x128xf32>,
    return
  }
  func.func @transform_0(%arg0: i32) -> (i32, i32, i32) {
    %c0_i32 = arith.constant 0 : i32
    %c0_i32_0 = arith.constant 0 : i32
    %c0_i32_1 = arith.constant 0 : i32
    return %arg0, %c0_i32, %c0_i32_0 : i32, i32, i32
  }
  func.func @transform_1(%arg0: i32) -> (i32, i32, i32) {
    %c0_i32 = arith.constant 0 : i32
    %c0_i32_0 = arith.constant 0 : i32
    %c0_i32_1 = arith.constant 0 : i32
    return %arg0, %c0_i32, %c0_i32_0 : i32, i32, i32
  }
  func.func @transform_2(%arg0: i32) -> (i32, i32) {
    %c0_i32 = arith.constant 0 : i32
    %c0_i32_0 = arith.constant 0 : i32
    %c0_i32_1 = arith.constant 0 : i32
    return %c0_i32, %c0_i32_0 : i32, i32
  }
  func.func @transform_3(%arg0: i32) -> (i32, i32) {
    %c0_i32 = arith.constant 0 : i32
    %c0_i32_0 = arith.constant 0 : i32
    %c0_i32_1 = arith.constant 0 : i32
    return %c0_i32, %c0_i32_0 : i32, i32
  }
  func.func @transform_4(%arg0: i32) -> (i32, i32) {
    %c0_i32 = arith.constant 0 : i32
    %c0_i32_0 = arith.constant 0 : i32
    %c0_i32_1 = arith.constant 0 : i32
    return %c0_i32, %c0_i32_0 : i32, i32
  }
  func.func @transform_5(%arg0: i32) -> (i32, i32) {
    %c0_i32 = arith.constant 0 : i32
    %c0_i32_0 = arith.constant 0 : i32
    %c0_i32_1 = arith.constant 0 : i32
    return %c0_i32, %c0_i32_0 : i32, i32
  }
  func.func @transform_6(%arg0: i32) -> (i32, i32) {
    %c0_i32 = arith.constant 0 : i32
    %c0_i32_0 = arith.constant 0 : i32
    return %arg0, %c0_i32 : i32, i32
  }
}

</mosaic_0001>

<bundles_post_ra>
// kernel: tpu_custom_call.1
= control target key start
LH: loop header
LB: loop body
LE: loop exit
PB: predicated region body
PF: predicated region fallthrough
CT: control target
= control target key end

     0   :  { %11 = vsyncpa [#allocation3], 0  ;;  %s1004_s0 = inlined_call_operand.vmem [shape: f32[2,8,2], index: 0, kind: input, shape index: {}]   ;;  %s1005_s1 = inlined_call_operand.vmem [shape: f32[2,2,8], index: 1, kind: input, shape index: {}]   ;;  %s1006_s2 = inlined_call_operand.vmem [shape: f32[2,64], index: 2, kind: input, shape index: {}]   ;;  %s1007_s3 = inlined_call_operand.vmem [shape: f32[1,64], index: 3, kind: input, shape index: {}]   ;;  %s1008_s4 = inlined_call_operand.hbm [shape: f32[64,128], index: 4, kind: input, shape index: {}]   ;;  %s1009_s5 = inlined_call_operand.vmem [shape: f32[1,128], index: 5, kind: input, shape index: {}]   ;;  %s1010_s6 = inlined_call_operand.hbm [shape: f32[2,128], index: 6, kind: output, shape index: {}]  }
   0x1   :  { %12 = vsyncpa [#allocation4], 0  ;;  %s773_s21 = smov [#allocation2]   ;;  %s725_s25 = scalar_lea.hbm %s1008_s4, 1024 }
   0x2   :  { %s26_s22 = sshll.u32 %s773_s21, 4  ;;  %p726_p0 = scmp.ne.s32.totalorder %s1008_s4, %s725_s25  ;;  %s27_s22 = int_to_ptr.vmem [resolvable:$true] %s26_s22 }
   0x3   :  { %p729_p1 = scmp.lt.u32.totalorder %s725_s25, %s1008_s4 }
   0x5   :  { %p731_p2 = pnand %p729_p1, %p726_p0 }
   0x7   :  { %734 = shalt.err (!%p731_p2)
}
   0x8   :  { %s735_s30 = scalar_lea.vmem %s27_s22, 1024  ;;  %p740_p4 = scmp.lt.s32.totalorder %s27_s22, %s27_s22 }
   0x9   :  { %p736_p3 = scmp.ne.s32.totalorder %s27_s22, %s735_s30  ;;  %p741_p5 = scmp.lt.s32.totalorder %s735_s30, %s735_s30 }
   0xb   :  { %p742_p6 = por %p741_p5, %p740_p4 }
   0xd   :  { %p743_p7 = pnand %p742_p6, %p736_p3 }
   0xf   :  { %746 = shalt.err (!%p743_p7)
}
  0x10   :  { %s774_s7 = smov 128   ;;  %s775_s8 = smov 8  }
  0x11   :  { %32 = dma.hbm_to_vmem [thread:$0]  %s1008_s4, 1024, %s27_s22, [#allocation3], %s774_s7, %s774_s7, %s775_s8  }
  0x12   :  { %769 = dma.done.wait [#allocation3], 1024  }
  0x13   :  { %770 = vsyncadd [#allocation3], 4294966272  ;;  %v776_v0 = vmov 1   ;;  %v777_v1 = vmov 0   ;;  %v847_v2 = vld [vmem:[%s1004_s0] sm:$0xff]  ;;  %v854_v3 = vld [vmem:[%s1004_s0 + $0x8] sm:$0xff]  ;;  %v52_v4 = vlaneseq }
  0x14   :  { %668 = vset.pattern.permute.xlu1 %v776_v0  ;;  %667 = vset.pattern.permute.xlu0 %v777_v1  ;;  %v40_v8 = vld [vmem:[%s1005_s1] sm:$0x3]  ;;  %v41_v11 = vld [vmem:[%s1005_s1 + $0x2] sm:$0x3]  ;;  %vm92_vm0 = vcmask 64512   ;;  %v778_v27 = vmov 0.0  }
  0x15   :  { %63 = vperm.xlu1 %668, %v847_v2   ;;  %44 = vperm.xlu0 %667, %v847_v2   ;;  %v858_v5 = vshrl.u32 %v52_v4, 7  ;;  %v779_v34 = vmov 3   ;;  %v780_v35 = vmov 2   ;;  %v781_v36 = vmov 4   ;;  %s785_s1 = smov 127   ;;  %s786_s17 = smov 126  }
  0x16   :  { %v782_v37 = vmov 5   ;;  %v783_v38 = vmov 6   ;;  %v784_v39 = vmov 7   ;;  %s787_s18 = smov 125   ;;  %s788_s19 = smov 124   ;;  %vm793_vm3 = vmmov 0  }
  0x17   :  { %v861_v6 = vsub.s32 1, %v858_v5  ;;  %v864_v7 = vsub.s32 0, %v858_v5  ;;  %v153_v45 = vsub.s32 2, %v858_v5  ;;  %v173_v63 = vsub.s32 3, %v858_v5  ;;  %s789_s20 = smov 123   ;;  %s790_s21 = smov 122   ;;  %630 = vmatprep.mubr.msk.f32.mxu0 %vm793_vm3, %v778_v27 }
  0x18   :  { %s791_s22 = smov 121   ;;  %vm474_vm4 = vcmask 523264   ;;  %vm508_vm5 = vcmask 1041409   ;;  %s794_s29 = smov [#allocation5]  }
  0x19   :  { %67 = vperm.xlu1 %668, %v854_v3   ;;  %49 = vperm.xlu0 %667, %v854_v3   ;;  %v73_v9 = vrot.slane %v40_v8, %v861_v6  ;;  %v55_v10 = vrot.slane %v40_v8, %v864_v7  ;;  %v77_v16 = vrot.slane %v41_v11, %v861_v6  ;;  %s589_s30 = sshll.u32 %s794_s29, 4  ;;  %s590_s30 = int_to_ptr.vmem [resolvable:$true] %s589_s30 }
  0x1a   :  { %v59_v17 = vrot.slane %v41_v11, %v864_v7  ;;  %s747_s7 = scalar_lea.vmem %s590_s30, 32  ;;  %p752_p9 = scmp.lt.s32.totalorder %s590_s30, %s590_s30 }
  0x1b   :  { %p748_p8 = scmp.ne.s32.totalorder %s590_s30, %s747_s7  ;;  %p753_p10 = scmp.lt.s32.totalorder %s747_s7, %s747_s7 }
  0x1d   :  { %p754_p11 = por %p753_p10, %p752_p9 }
  0x1f   :  { %p755_p12 = pnand %p754_p11, %p748_p8 }
  0x94   :  { %v64_v12 = vpop.permute.xlu1 %63  ;;  %v45_v13 = vpop.permute.xlu0 %44 }
  0x95   :  { %v78_v14 = vsub.f32 %v64_v12, %v73_v9  ;;  %v60_v15 = vsub.f32 %v45_v13, %v55_v10 }
  0x97   :  { %v82_v18 = vmul.f32 %v78_v14, %v78_v14  ;;  %v80_v19 = vmul.f32 %v60_v15, %v60_v15 }
  0x98   :  { %v68_v20 = vpop.permute.xlu1 %67  ;;  %v50_v21 = vpop.permute.xlu0 %49 }
  0x99   :  { %v84_v22 = vadd.f32 %v82_v18, %v80_v19  ;;  %v79_v23 = vsub.f32 %v68_v20, %v77_v16  ;;  %v61_v24 = vsub.f32 %v50_v21, %v59_v17  ;;  %v193_v18 = vsub.s32 4, %v858_v5 }
  0x9b   :  { %vm86_vm1 = vcmp.lt.f32.partialorder %v84_v22, 0.25  ;;  %v83_v25 = vmul.f32 %v79_v23, %v79_v23  ;;  %v81_v26 = vmul.f32 %v61_v24, %v61_v24 }
  0x9c   :  { %v877_v28 = vsel %vm86_vm1, 1.0, %v778_v27 }
  0x9d   :  { %v85_v29 = vadd.f32 %v83_v25, %v81_v26  ;;  %v93_v30 = vsel %vm92_vm0, %v877_v28, 0.0 }
  0x9e   :  { %94 = vadd.xlane.f32.xlu0 %v93_v30  ;;  %v213_v30 = vsub.s32 5, %v858_v5 }
  0x9f   :  { %vm87_vm2 = vcmp.lt.f32.partialorder %v85_v29, 0.25 }
  0xa0   :  { %v881_v31 = vsel %vm87_vm2, 1.0, %v778_v27  ;;  %v600_v27 = vld [vmem:[%s1006_s2] ss:$0 sm:$0xff] }
  0xa1   :  { %v96_v32 = vsel %vm92_vm0, %v881_v31, 0.0  ;;  %v674_v33 = vpack.i.bf16 %v881_v31, %v877_v28 }
  0xa2   :  { %97 = vadd.xlane.f32.xlu1 %v96_v32 }
  0xb3   :  { %675 = vperm.xlu1 %668, %v674_v33  }
  0xb4   :  { %670 = vperm.xlu0 %667, %v674_v33  }
  0xb7   :  { %685 = vset.pattern.permute.xlu1 %v779_v34 }
  0xb8   :  { %679 = vset.pattern.permute.xlu0 %v780_v35  ;;  %687 = vperm.xlu1 %685, %v674_v33  }
  0xb9   :  { %681 = vperm.xlu0 %679, %v674_v33  }
  0xbc   :  { %691 = vset.pattern.permute.xlu1 %v781_v36 }
  0xbd   :  { %697 = vset.pattern.permute.xlu0 %v782_v37  ;;  %693 = vperm.xlu1 %691, %v674_v33  }
  0xbe   :  { %699 = vperm.xlu0 %697, %v674_v33  }
  0xc1   :  { %703 = vset.pattern.permute.xlu1 %v783_v38 }
  0xc2   :  { %705 = vperm.xlu1 %703, %v674_v33   ;;  %715 = vset.pattern.permute.xlu0 %v777_v1 }
  0xc6   :  { %709 = vset.pattern.permute.xlu1 %v784_v39 }
  0xc7   :  { %711 = vperm.xlu1 %709, %v674_v33  }
  0xcb   :  { %716 = vset.pattern.permute.xlu1 %v777_v1 }
 0x12b   :  { %v95_v40 = vpop.xlane.xlu0 %94 }
 0x12c   :  { %721 = vrsqrt.f32 %v95_v40 }
 0x12f   :  { %v98_v41 = vpop.xlane.xlu1 %97 }
 0x130   :  { %723 = vrsqrt.f32 %v98_v41 }
 0x133   :  { %v676_v42 = vpop.permute.xlu1 %675  ;;  %v671_v43 = vpop.permute.xlu0 %670 }
 0x134   :  { %v677_v50 = vunpack.i.l.bf16 %v676_v42  ;;  %v672_v53 = vunpack.i.l.bf16 %v671_v43  ;;  %v678_v62 = vunpack.i.h.bf16 %v676_v42  ;;  %v673_v8 = vunpack.i.h.bf16 %v671_v43 }
 0x136   :  { %v888_v44 = vpop.eup %721 }
 0x137   :  { %v893_v46 = vmul.f32 %v888_v44, %v847_v2  ;;  %v688_v47 = vpop.permute.xlu1 %687  ;;  %v323_v48 = vrot.slane %v888_v44, %v861_v6  ;;  %v343_v57 = vrot.slane %v888_v44, %v153_v45  ;;  %v363_v19 = vrot.slane %v888_v44, %v173_v63 }
 0x138   :  { %v682_v49 = vpop.permute.xlu0 %681  ;;  %v689_v11 = vunpack.i.l.bf16 %v688_v47  ;;  %v383_v35 = vrot.slane %v888_v44, %v193_v18  ;;  %v690_v36 = vunpack.i.h.bf16 %v688_v47 }
 0x139   :  { %v134_v51 = vrot.slane %v893_v46, %v861_v6  ;;  %v116_v52 = vrot.slane %v893_v46, %v864_v7  ;;  %v154_v55 = vrot.slane %v893_v46, %v153_v45  ;;  %v328_v56 = vmul.f32 %v877_v28, %v323_v48 }
 0x13a   :  { %v901_v54 = vpop.eup %723  ;;  %v683_v61 = vunpack.i.l.bf16 %v682_v49  ;;  %v348_v13 = vmul.f32 %v877_v28, %v343_v57  ;;  %v684_v21 = vunpack.i.h.bf16 %v682_v49  ;;  %v368_v34 = vmul.f32 %v877_v28, %v363_v19 }
 0x13b   :  { %v908_v58 = vmul.f32 %v901_v54, %v854_v3  ;;  %v139_v59 = vmul.f32 %v677_v50, %v134_v51  ;;  %v121_v60 = vmul.f32 %v672_v53, %v116_v52  ;;  %332 = vrot.lane.b32.xlu0 %v328_v56, %s785_s1  ;;  %v174_v3 = vrot.slane %v893_v46, %v173_v63 }
 0x13c   :  { %v694_v10 = vpop.permute.xlu1 %693  ;;  %v327_v12 = vrot.slane %v901_v54, %v861_v6  ;;  %v159_v17 = vmul.f32 %v683_v61, %v154_v55  ;;  %v347_v33 = vrot.slane %v901_v54, %v153_v45  ;;  %v194_v39 = vrot.slane %v893_v46, %v193_v18 }
 0x13d   :  { %v138_v2 = vrot.slane %v908_v58, %v861_v6  ;;  %v120_v4 = vrot.slane %v908_v58, %v864_v7  ;;  %v141_v9 = vadd.f32 %v139_v59, %v121_v60  ;;  %v158_v16 = vrot.slane %v908_v58, %v153_v45  ;;  %v700_v32 = vpop.permute.xlu0 %699 }
 0x13e   :  { %v329_v23 = vmul.f32 %v881_v31, %v327_v12  ;;  %v178_v6 = vrot.slane %v908_v58, %v173_v63  ;;  %v179_v24 = vmul.f32 %v689_v11, %v174_v3  ;;  %v695_v26 = vunpack.i.l.bf16 %v694_v10 }
 0x13f   :  { %v140_v14 = vmul.f32 %v678_v62, %v138_v2  ;;  %v122_v15 = vmul.f32 %v673_v8, %v120_v4  ;;  %352 = vrot.lane.b32.xlu0 %v348_v13, %s786_s17  ;;  %v161_v22 = vadd.f32 %v159_v17, %v141_v9  ;;  %v160_v25 = vmul.f32 %v684_v21, %v158_v16 }
 0x140   :  { %334 = vrot.lane.b32.xlu1 %v329_v23, %s785_s1  ;;  %v198_v40 = vrot.slane %v908_v58, %v193_v18  ;;  %v349_v41 = vmul.f32 %v881_v31, %v347_v33  ;;  %v367_v42 = vrot.slane %v901_v54, %v173_v63  ;;  %v180_v43 = vmul.f32 %v690_v36, %v178_v6 }
 0x141   :  { %v142_v20 = vadd.f32 %v140_v14, %v122_v15  ;;  %v925_v29 = vpop.permute.xlu1 %705  ;;  %v181_v38 = vadd.f32 %v179_v24, %v161_v22  ;;  %v696_v48 = vunpack.i.h.bf16 %v694_v10  ;;  %v199_v45 = vmul.f32 %v695_v26, %v194_v39 }
 0x142   :  { %v701_v49 = vunpack.i.l.bf16 %v700_v32  ;;  %v233_v50 = vsub.s32 6, %v858_v5  ;;  %v388_v47 = vmul.f32 %v877_v28, %v383_v35  ;;  %v403_v51 = vrot.slane %v888_v44, %v213_v30 }
 0x143   :  { %v162_v37 = vadd.f32 %v160_v25, %v142_v20  ;;  %372 = vrot.lane.b32.xlu0 %v368_v34, %s787_s18  ;;  %v201_v53 = vadd.f32 %v199_v45, %v181_v38  ;;  %v214_v55 = vrot.slane %v893_v46, %v213_v30  ;;  %v707_v57 = vunpack.i.l.bf16 %v925_v29 }
 0x144   :  { %354 = vrot.lane.b32.xlu1 %v349_v41, %s786_s17  ;;  %v253_v59 = vsub.s32 7, %v858_v5  ;;  %v369_v60 = vmul.f32 %v881_v31, %v367_v42  ;;  %v387_v61 = vrot.slane %v901_v54, %v193_v18  ;;  %v200_v62 = vmul.f32 %v696_v48, %v198_v40 }
 0x145   :  { %v182_v52 = vadd.f32 %v180_v43, %v162_v37  ;;  %v218_v63 = vrot.slane %v908_v58, %v213_v30  ;;  %v702_v2 = vunpack.i.h.bf16 %v700_v32  ;;  %v219_v4 = vmul.f32 %v701_v49, %v214_v55 }
 0x146   :  { %v712_v56 = vpop.permute.xlu1 %711  ;;  %v234_v8 = vrot.slane %v893_v46, %v233_v50  ;;  %v408_v10 = vmul.f32 %v877_v28, %v403_v51  ;;  %v423_v11 = vrot.slane %v888_v44, %v233_v50  ;;  %v254_v13 = vrot.slane %v893_v46, %v253_v59 }
 0x147   :  { %392 = vrot.lane.b32.xlu0 %v388_v47, %s788_s19  ;;  %v713_v9 = vunpack.i.l.bf16 %v712_v56  ;;  %v202_v5 = vadd.f32 %v200_v62, %v182_v52  ;;  %v221_v3 = vadd.f32 %v219_v4, %v201_v53  ;;  %v389_v14 = vmul.f32 %v881_v31, %v387_v61 }
 0x148   :  { %374 = vrot.lane.b32.xlu1 %v369_v60, %s787_s18  ;;  %v239_v12 = vmul.f32 %v707_v57, %v234_v8  ;;  %v407_v15 = vrot.slane %v901_v54, %v213_v30  ;;  %v220_v16 = vmul.f32 %v702_v2, %v218_v63  ;;  %v708_v17 = vunpack.i.h.bf16 %v925_v29 }
 0x149   :  { %v259_v18 = vmul.f32 %v713_v9, %v254_v13  ;;  %v428_v19 = vmul.f32 %v877_v28, %v423_v11  ;;  %v443_v20 = vrot.slane %v888_v44, %v253_v59  ;;  %v238_v22 = vrot.slane %v908_v58, %v233_v50  ;;  %v492_v13 = vld [vmem:[#allocation2 + $0x8] sm:$0xff] }
 0x14a   :  { %v222_v21 = vadd.f32 %v220_v16, %v202_v5  ;;  %v241_v23 = vadd.f32 %v239_v12, %v221_v3  ;;  %v409_v46 = vmul.f32 %v881_v31, %v407_v15  ;;  %v427_v6 = vrot.slane %v901_v54, %v233_v50  ;;  %v491_v12 = vld [vmem:[#allocation2] sm:$0xff] }
 0x14b   :  { %412 = vrot.lane.b32.xlu0 %v408_v10, %s789_s20  ;;  %v240_v24 = vmul.f32 %v708_v17, %v238_v22  ;;  %v714_v25 = vunpack.i.h.bf16 %v712_v56  ;;  %v448_v29 = vmul.f32 %v877_v28, %v443_v20  ;;  %v258_v32 = vrot.slane %v908_v58, %v253_v59  ;;  %v494_v17 = vld [vmem:[#allocation2 + $0x18] sm:$0xff] }
 0x14c   :  { %394 = vrot.lane.b32.xlu1 %v389_v14, %s788_s19  ;;  %v261_v26 = vadd.f32 %v259_v18, %v241_v23  ;;  %v429_v33 = vmul.f32 %v881_v31, %v427_v6  ;;  %v447_v34 = vrot.slane %v901_v54, %v253_v59  ;;  %v313_v42 = vrot.slane %v888_v44, %v864_v7  ;;  %v493_v14 = vld [vmem:[#allocation2 + $0x10] sm:$0xff] }
 0x14d   :  { %v242_v30 = vadd.f32 %v240_v24, %v222_v21  ;;  %v260_v35 = vmul.f32 %v714_v25, %v258_v32  ;;  %v317_v47 = vrot.slane %v901_v54, %v864_v7  ;;  %v792_v15 = vmov 0.0|0.0   ;;  %v498_v21 = vld [vmem:[#allocation2 + $0x38] sm:$0xff]  ;;  %v601_v24 = vld [vmem:[%s1006_s2 + $0x1] ss:$0 sm:$0xff] }
 0x14e   :  { %v263_v36 = vmul.f32 %v888_v44, %v261_v26  ;;  %v449_v38 = vmul.f32 %v881_v31, %v447_v34  ;;  %v318_v45 = vmul.f32 %v877_v28, %v313_v42  ;;  %633 = vmatprep.subr.bf16.mxu0 %v792_v15  ;;  %v634_v16 = vpack.c.bf16 %v492_v13, %v491_v12  ;;  %v602_v34 = vld [vmem:[%s1007_s3] ss:$0 sm:$0xff] }
 0x14f   :  { %432 = vrot.lane.b32.xlu0 %v428_v19, %s790_s21  ;;  %v262_v37 = vadd.f32 %v260_v35, %v242_v30  ;;  %v637_v18 = vpack.c.bf16 %v494_v17, %v493_v14  ;;  %v496_v19 = vld [vmem:[#allocation2 + $0x28] sm:$0xff] }
 0x150   :  { %414 = vrot.lane.b32.xlu1 %v409_v46, %s789_s20  ;;  %635 = vmatpush3.bf16.msra.mxu0 %v634_v16 }
 0x151   :  { %v264_v39 = vmul.f32 %v901_v54, %v262_v37  ;;  %636 = vmatprep.subr.bf16.mxu0 %v792_v15 }
 0x153   :  { %452 = vrot.lane.b32.xlu0 %v448_v29, %s791_s22 }
 0x154   :  { %434 = vrot.lane.b32.xlu1 %v429_v33, %s790_s21  ;;  %638 = vmatpush3.bf16.msra.mxu0 %v637_v18 }
 0x155   :  { %639 = vmatprep.subr.bf16.mxu0 %v792_v15 }
 0x157   :  { %268 = vperm.xlu0 %715, %v263_v36  }
 0x158   :  { %454 = vrot.lane.b32.xlu1 %v449_v38, %s791_s22 }
 0x15b   :  { %718 = vset.pattern.permute.xlu0 %v776_v0 }
 0x15c   :  { %288 = vperm.xlu0 %718, %v264_v39   ;;  %273 = vperm.xlu1 %716, %v264_v39  }
 0x160   :  { %720 = vset.pattern.permute.xlu0 %v777_v1  ;;  %717 = vset.pattern.permute.xlu1 %v776_v0 }
 0x161   :  { %284 = vperm.xlu1 %717, %v263_v36  }
 0x165   :  { %719 = vset.pattern.permute.xlu1 %v777_v1  ;;  %v319_v1 = vmul.f32 %v881_v31, %v317_v47 }
 0x1ad   :  { %v333_v58 = vpop.permute.xlu0 %332 }
 0x1ae   :  { %v338_v50 = vadd.f32 %v333_v58, %v318_v45 }
 0x1b1   :  { %v353_v40 = vpop.permute.xlu0 %352 }
 0x1b2   :  { %v335_v41 = vpop.permute.xlu1 %334  ;;  %v358_v0 = vadd.f32 %v353_v40, %v338_v50 }
 0x1b3   :  { %v339_v56 = vadd.f32 %v335_v41, %v319_v1 }
 0x1b5   :  { %v373_v43 = vpop.permute.xlu0 %372 }
 0x1b6   :  { %v355_v48 = vpop.permute.xlu1 %354  ;;  %v378_v53 = vadd.f32 %v373_v43, %v358_v0 }
 0x1b7   :  { %v359_v60 = vadd.f32 %v355_v48, %v339_v56 }
 0x1b9   :  { %v393_v49 = vpop.permute.xlu0 %392 }
 0x1ba   :  { %v375_v51 = vpop.permute.xlu1 %374  ;;  %v398_v57 = vadd.f32 %v393_v49, %v378_v53 }
 0x1bb   :  { %v379_v63 = vadd.f32 %v375_v51, %v359_v60 }
 0x1bd   :  { %v413_v52 = vpop.permute.xlu0 %412 }
 0x1be   :  { %v395_v55 = vpop.permute.xlu1 %394  ;;  %v418_v61 = vadd.f32 %v413_v52, %v398_v57 }
 0x1bf   :  { %v399_v4 = vadd.f32 %v395_v55, %v379_v63 }
 0x1c1   :  { %v433_v59 = vpop.permute.xlu0 %432 }
 0x1c2   :  { %v415_v62 = vpop.permute.xlu1 %414  ;;  %v438_v28 = vadd.f32 %v433_v59, %v418_v61 }
 0x1c3   :  { %v419_v7 = vadd.f32 %v415_v62, %v399_v4  ;;  %v603_v62 = vld [vmem:[%s1009_s5] ss:$0 sm:$0xff] }
 0x1c5   :  { %v453_v2 = vpop.permute.xlu0 %452 }
 0x1c6   :  { %v458_v8 = vadd.f32 %v453_v2, %v438_v28  ;;  %v435_v9 = vpop.permute.xlu1 %434 }
 0x1c7   :  { %v439_v11 = vadd.f32 %v435_v9, %v419_v7 }
 0x1c8   :  { %v460_v10 = vmul.f32 %v888_v44, %v458_v8  ;;  %v495_v44 = vld [vmem:[#allocation2 + $0x20] sm:$0xff] }
 0x1c9   :  { %v640_v20 = vpack.c.bf16 %v496_v19, %v495_v44 }
 0x1ca   :  { %464 = vperm.xlu1 %719, %v460_v10   ;;  %v455_v31 = vpop.permute.xlu1 %454 }
 0x1cb   :  { %v459_v5 = vadd.f32 %v455_v31, %v439_v11  ;;  %641 = vmatpush3.bf16.msra.mxu0 %v640_v20 }
 0x1cc   :  { %642 = vmatprep.subr.bf16.mxu0 %v792_v15 }
 0x1cd   :  { %v461_v3 = vmul.f32 %v901_v54, %v459_v5  ;;  %v497_v54 = vld [vmem:[#allocation2 + $0x30] sm:$0xff] }
 0x1ce   :  { %v643_v22 = vpack.c.bf16 %v498_v21, %v497_v54 }
 0x1cf   :  { %469 = vperm.xlu1 %719, %v461_v3  }
 0x1d0   :  { %644 = vmatpush3.bf16.msra.mxu0 %v643_v22 }
 0x1d6   :  { %v269_v46 = vpop.permute.xlu0 %268 }
 0x1d7   :  { %v280_v26 = vmul.f32 %v600_v27, %v269_v46 }
 0x1db   :  { %v274_v23 = vpop.permute.xlu1 %273  ;;  %v289_v29 = vpop.permute.xlu0 %288 }
 0x1dc   :  { %v281_v32 = vmul.f32 %v600_v27, %v274_v23  ;;  %v296_v33 = vmul.f32 %v601_v24, %v289_v29 }
 0x1de   :  { %v298_v36 = vadd.f32 %v296_v33, %v281_v32 }
 0x1e0   :  { %v285_v6 = vpop.permute.xlu1 %284  ;;  %v307_v58 = vadd.f32 %v602_v34, %v298_v36 }
 0x1e1   :  { %v295_v25 = vmul.f32 %v601_v24, %v285_v6 }
 0x1e2   :  { %v309_v42 = vmax.f32 %v307_v58, 0.0 }
 0x1e3   :  { %v297_v30 = vadd.f32 %v295_v25, %v280_v26 }
 0x1e5   :  { %v306_v35 = vadd.f32 %v602_v34, %v297_v30 }
 0x1e7   :  { %v308_v37 = vmax.f32 %v306_v35, 0.0 }
 0x249   :  { %v465_v38 = vpop.permute.xlu1 %464 }
 0x24a   :  { %v472_v39 = vmul.f32 %v465_v38, %v308_v37 }
 0x24c   :  { %v475_v40 = vsel %vm474_vm4, %v472_v39, 0.0 }
 0x24d   :  { %v476_v41 = vrot.slane %v475_v40, 4 }
 0x24e   :  { %v470_v48 = vpop.permute.xlu1 %469 }
 0x24f   :  { %v477_v43 = vadd.f32 %v476_v41, %v475_v40  ;;  %v473_v45 = vmul.f32 %v470_v48, %v309_v42 }
 0x251   :  { %v478_v49 = vrot.slane %v477_v43, 2  ;;  %v482_v50 = vsel %vm474_vm4, %v473_v45, 0.0 }
 0x252   :  { %v483_v51 = vrot.slane %v482_v50, 4 }
 0x253   :  { %v479_v47 = vadd.f32 %v478_v49, %v477_v43 }
 0x254   :  { %v484_v0 = vadd.f32 %v483_v51, %v482_v50 }
 0x255   :  { %v480_v52 = vrot.slane %v479_v47, 1 }
 0x256   :  { %v485_v1 = vrot.slane %v484_v0, 2 }
 0x257   :  { %v481_v55 = vadd.f32 %v480_v52, %v479_v47 }
 0x258   :  { %v486_v53 = vadd.f32 %v485_v1, %v484_v0 }
 0x259   :  { %v489_v59 = vmul.f32 0.125, %v481_v55 }
 0x25a   :  { %v487_v56 = vrot.slane %v486_v53, 1 }
 0x25c   :  { %v488_v57 = vadd.f32 %v487_v56, %v486_v53 }
 0x25e   :  { %v490_v60 = vmul.f32 0.125, %v488_v57 }
 0x260   :  { %v509_v61 = vsel %vm508_vm5, %v490_v60, %v489_v59 }
 0x261   :  { %631 = vmatmul.mubr.msk.f32.vlgmr.msra.gmra.mrb[0].mxu0 %vm474_vm4, %v509_v61 }
 0x334   :  { %v578_v63 = vpop.f32.mrb[0].mxu0 }
 0x335   :  { %v579_v28 = vadd.f32 %v603_v62, %v578_v63  ;;  %v632_v2 = vpop.f32.mrb[1].mxu0 }
 0x337   :  { %582 = vst [vmem:[#allocation5] sm:$0x3] %v579_v28 }
 0x338   :  { %758 = shalt.err (!%p755_p12)
}
 0x339   :  { %s759_s10 = scalar_lea.hbm %s1010_s6, 32 }
 0x33a   :  { %p760_p13 = scmp.ne.s32.totalorder %s1010_s6, %s759_s10  ;;  %p763_p0 = scmp.lt.u32.totalorder %s759_s10, %s1010_s6 }
 0x33c   :  { %p765_p1 = pnand %p763_p0, %p760_p13 }
 0x33e   :  { %768 = shalt.err (!%p765_p1)
}
 0x33f   :  { %592 = dma.vmem_to_hbm [thread:$0]  %s590_s30, 32, %s1010_s6, [#allocation4]  }
 0x340   :  { %771 = dma.done.wait [#allocation4], 32  }
 0x341   :  { %772 = vsyncadd [#allocation4], 4294967264 }
 0x342   :  { %596 = vsyncpa [#allocation3], 1 }
 0x343   :  { %597 = vsyncpa [#allocation4], 1 }

</bundles_post_ra>
